<compile_context>
chip_gen: v5e
topology: v5e:2x2
jax: 0.10.0
libtpu: 0.0.40
codegen_flags: <defaults>
</compile_context>

<pallas_src>
import functools

import jax
import jax.numpy as jnp
from jax.experimental import pallas as pl
from jax.experimental.pallas import tpu as pltpu

BN_EPS = 1e-5                # nn.BatchNorm1d default eps
_LANE = 128
_MAX_TILE_ROWS = 1024
_TILE_BYTES_BUDGET = 2 * 1024 * 1024
_FUSED_F32_BYTES = 4 * 1024 * 1024     # fused path if padded f32 slab fits this
_VMEM_LIMIT = 32 * 1024 * 1024

# dot_general dimension numbers for A @ B^T (contract last dim of both operands).
_TRANS_B = (((1,), (1,)), ((), ()))


def _round_up(x, m):
    return ((x + m - 1) // m) * m


def _rowsum_via_mxu(x):
    """(R, D) -> (1, D) column sums as a thin ones(8,R) @ x matmul on the MXU."""
    ones8 = jnp.ones((8, x.shape[0]), jnp.float32)
    return jnp.dot(ones8, x, preferred_element_type=jnp.float32)[0:1, :]


def _norms_from_coeffs(x, x2, inv, w2, c):
    """Per-row ||(x-mean)*rsqrt(var+eps)||^2 = x2 @ inv + x @ w2 + c, via MXU A@B^T."""
    inv8 = jnp.broadcast_to(inv, (8, inv.shape[1]))
    w28 = jnp.broadcast_to(w2, (8, w2.shape[1]))
    t1 = jax.lax.dot_general(inv8, x2, _TRANS_B, preferred_element_type=jnp.float32)
    t2 = jax.lax.dot_general(w28, x, _TRANS_B, preferred_element_type=jnp.float32)
    return t1[0:1, :] + t2[0:1, :] + c            # (1, R)


def _coeffs_from_stats(s, s2, inv_count):
    """(1,D) sum / sumsq -> (inv, w2, c) normalization coefficients."""
    mean = s * inv_count
    # Single-pass (biased) variance; clamp at 0 to guard E[x^2]-E[x]^2 cancellation.
    var = jnp.maximum(s2 * inv_count - mean * mean, 0.0)
    inv = 1.0 / (var + BN_EPS)                    # (1, D)
    w2 = (-2.0 * mean) * inv                      # (1, D)
    c = jnp.sum(mean * mean * inv)                # scalar constant term
    return inv, w2, c


# --------------------------------------------------------------------------- #
# Fused single-pass kernel (whole padded x resident in VMEM).
# --------------------------------------------------------------------------- #
def _fused_kernel(x_ref, o_ref, *, inv_count):
    x = x_ref[...].astype(jnp.float32)            # (R, D)
    x2 = x * x                                    # the only full-slab VPU pass
    s = _rowsum_via_mxu(x)                        # (1, D)
    s2 = _rowsum_via_mxu(x2)                      # (1, D)
    inv, w2, c = _coeffs_from_stats(s, s2, inv_count)
    o_ref[...] = _norms_from_coeffs(x, x2, inv, w2, c).astype(o_ref.dtype)   # (1, R)


# --------------------------------------------------------------------------- #
# Two-phase tiled kernels (large inputs).
# --------------------------------------------------------------------------- #
def _stats_kernel(x_ref, stats_ref):
    """Accumulate per-feature sum (row 0) and sum-of-squares (row 1) over row tiles."""
    @pl.when(pl.program_id(0) == 0)
    def _init():
        stats_ref[...] = jnp.zeros_like(stats_ref)

    x = x_ref[...].astype(jnp.float32)            # (R, D), cast per tile
    x2 = x * x
    stats_ref[0:1, :] += _rowsum_via_mxu(x)
    stats_ref[1:2, :] += _rowsum_via_mxu(x2)


def _normalize_kernel(stats_ref, x_ref, o_ref, *, inv_count):
    """Per-row squared L2 norm of the batch-normalized features for one row tile."""
    x = x_ref[...].astype(jnp.float32)            # (R, D)
    x2 = x * x
    inv, w2, c = _coeffs_from_stats(stats_ref[0:1, :], stats_ref[1:2, :], inv_count)
    o_ref[...] = _norms_from_coeffs(x, x2, inv, w2, c).astype(o_ref.dtype)   # (1, R)


# --------------------------------------------------------------------------- #
# Wrapper
# --------------------------------------------------------------------------- #
def prob_objectness_head(x, *, force_tiled=False):
    """x: (B, N, D) float array -> (B, N) float32 squared-norm objectness."""
    B, N, D = x.shape
    n_rows = B * N
    x2d = x.reshape(n_rows, D)                    # free reshape (leading dims only)
    inv_count = 1.0 / n_rows
    d_lanes = max(D, _LANE)

    # ---- Fused single-pass path: one HBM read of x, one kernel launch. ---- #
    padded_rows_fused = _round_up(n_rows, _LANE)
    if not force_tiled and padded_rows_fused * d_lanes * 4 <= _FUSED_F32_BYTES:
        xp = x2d
        if padded_rows_fused != n_rows:
            # Zero rows contribute nothing to sum/sumsq; inv_count uses true n_rows.
            xp = jnp.pad(x2d, ((0, padded_rows_fused - n_rows), (0, 0)))
        out = pl.pallas_call(
            functools.partial(_fused_kernel, inv_count=inv_count),
            out_shape=jax.ShapeDtypeStruct((1, padded_rows_fused), jnp.float32),
            grid=(1,),
            in_specs=[pl.BlockSpec((padded_rows_fused, D), lambda i: (0, 0))],
            out_specs=pl.BlockSpec((1, padded_rows_fused), lambda i: (0, 0)),
            compiler_params=pltpu.CompilerParams(
                dimension_semantics=("arbitrary",),
                vmem_limit_bytes=_VMEM_LIMIT),
        )(xp)
        return out.reshape(padded_rows_fused)[:n_rows].reshape(B, N)

    # ---- Two-phase tiled pipeline. ---- #
    # Row tile: a multiple of 128 (lane-dense output store), bounded by a VMEM
    # budget so double-buffered tiles fit comfortably on all generations.
    bytes_per_row = d_lanes * 4                   # f32 working set, lane-padded
    tile_rows = (_TILE_BYTES_BUDGET // bytes_per_row) // _LANE * _LANE
    tile_rows = int(max(_LANE, min(_MAX_TILE_ROWS, tile_rows)))
    tile_rows = min(tile_rows, _round_up(n_rows, _LANE))
    padded_rows = _round_up(n_rows, tile_rows)
    num_tiles = padded_rows // tile_rows
    if padded_rows != n_rows:
        x2d = jnp.pad(x2d, ((0, padded_rows - n_rows), (0, 0)))

    # Phase 1: per-feature sum / sum-of-squares (reduction over row tiles).
    stats = pl.pallas_call(
        _stats_kernel,
        out_shape=jax.ShapeDtypeStruct((2, D), jnp.float32),
        grid=(num_tiles,),
        in_specs=[pl.BlockSpec((tile_rows, D), lambda i: (i, 0))],
        out_specs=pl.BlockSpec((2, D), lambda i: (0, 0)),
        compiler_params=pltpu.CompilerParams(
            dimension_semantics=("arbitrary",),
            vmem_limit_bytes=_VMEM_LIMIT),
    )(x2d)

    # Phase 2: normalize + squared norm; row tiles are independent -> "parallel"
    # (shards across both TensorCores on v7x).
    out_tiles = pl.pallas_call(
        functools.partial(_normalize_kernel, inv_count=inv_count),
        out_shape=jax.ShapeDtypeStruct((num_tiles, tile_rows), jnp.float32),
        grid=(num_tiles,),
        in_specs=[pl.BlockSpec((2, D), lambda i: (0, 0)),
                  pl.BlockSpec((tile_rows, D), lambda i: (i, 0))],
        out_specs=pl.BlockSpec((1, tile_rows), lambda i: (i, 0)),
        compiler_params=pltpu.CompilerParams(
            dimension_semantics=("parallel",),
            vmem_limit_bytes=_VMEM_LIMIT),
    )(stats, x2d)

    # TODO(synk): running_mean/running_var tracking and the eval-mode
    # (freeze_prob_model) path are not implemented; this is the training-mode
    # forward only, matching the reference module's default behavior.
    return out_tiles.reshape(padded_rows)[:n_rows].reshape(B, N)


def _reference(x):
    # Pure-JAX reference of the module semantics (two-pass variance).
    B, N, D = x.shape
    xf = x.reshape(B * N, D).astype(jnp.float32)
    mean = jnp.mean(xf, axis=0, keepdims=True)
    var = jnp.mean((xf - mean) ** 2, axis=0, keepdims=True)   # biased
    y = (xf - mean) / jnp.sqrt(var + BN_EPS)
    return jnp.sum(y * y, axis=-1).reshape(B, N)


if __name__ == "__main__":
    # Small shapes consistent with the module: batch=2, num_queries=8, hidden=32.
    key = jax.random.PRNGKey(0)
    B, N, D = 2, 8, 32
    x = jax.random.normal(key, (B, N, D), dtype=jnp.float32)

    ref = jax.block_until_ready(_reference(x))

    # Fused single-pass path (selected automatically at this size).
    out_fused = jax.block_until_ready(prob_objectness_head(x))
    assert out_fused.shape == (B, N), out_fused.shape
    assert jnp.allclose(out_fused, ref, rtol=1e-3, atol=1e-3), "fused path mismatch"

    # Two-phase tiled path (forced, to exercise the large-input code path too).
    out_tiled = jax.block_until_ready(prob_objectness_head(x, force_tiled=True))
    assert out_tiled.shape == (B, N), out_tiled.shape
    assert jnp.allclose(out_tiled, ref, rtol=1e-3, atol=1e-3), "tiled path mismatch"

    print("KERNEL_OK")
</pallas_src>

<mosaic_0001>
module attributes {stable_mosaic.version = 11 : i64} {
  func.func @_fused_kernel(%arg0: i32, %arg1: memref<128x32xf32, #tpu.memory_space<vmem>>, %arg2: memref<1x128xf32, #tpu.memory_space<vmem>>) attributes {dimension_semantics = [#tpu.dimension_semantics<arbitrary>], iteration_bounds = array<i64: 1>, scalar_prefetch = 0 : i64, scratch_operands = 0 : i64, tpu.core_type = #tpu.core_type<tc>, window_params = [{pipeline_mode = #tpu.pipeline_mode<synchronous>, transform_indices = @transform_0, window_bounds = array<i64: 128, 32>}, {pipeline_mode = #tpu.pipeline_mode<synchronous>, transform_indices = @transform_1, window_bounds = array<i64: 1, 128>}]} {
    %c0 = arith.constant 0 : index
    %c0_0 = arith.constant 0 : index
    %0 = vector.load %arg1[%c0, %c0_0] : memref<128x32xf32, #tpu.memory_space<vmem>>, vector<128x32xf32>
    %1 = arith.mulf %0, %0 : vector<128x32xf32>
    %cst = arith.constant 1.000000e+00 : f32
    %2 = vector.broadcast %cst : f32 to vector<8x128xf32>
    %cst_1 = arith.constant dense<0.000000e+00> : vector<8x32xf32>
    %3 = tpu.matmul %2, %0, %cst_1 {dimension_numbers = #tpu.dot_dimension_numbers<[1], [0], [0], [1], [0, 0, 1, 1], [], []>} : vector<8x128xf32>, vector<128x32xf32>, vector<8x32xf32> -> vector<8x32xf32>
    %4 = vector.extract_strided_slice %3 {offsets = [0, 0], sizes = [1, 32], strides = [1, 1]} : vector<8x32xf32> to vector<1x32xf32>
    %cst_2 = arith.constant 1.000000e+00 : f32
    %5 = vector.broadcast %cst_2 : f32 to vector<8x128xf32>
    %cst_3 = arith.constant dense<0.000000e+00> : vector<8x32xf32>
    %6 = tpu.matmul %5, %1, %cst_3 {dimension_numbers = #tpu.dot_dimension_numbers<[1], [0], [0], [1], [0, 0, 1, 1], [], []>} : vector<8x128xf32>, vector<128x32xf32>, vector<8x32xf32> -> vector<8x32xf32>
    %7 = vector.extract_strided_slice %6 {offsets = [0, 0], sizes = [1, 32], strides = [1, 1]} : vector<8x32xf32> to vector<1x32xf32>
    %cst_4 = arith.constant 6.250000e-02 : f32
    %8 = vector.broadcast %cst_4 : f32 to vector<1x32xf32>
    %9 = arith.mulf %4, %8 : vector<1x32xf32>
    %cst_5 = arith.constant 6.250000e-02 : f32
    %10 = vector.broadcast %cst_5 : f32 to vector<1x32xf32>
    %11 = arith.mulf %7, %10 : vector<1x32xf32>
    %12 = arith.mulf %9, %9 : vector<1x32xf32>
    %13 = arith.subf %11, %12 : vector<1x32xf32>
    %cst_6 = arith.constant 0.000000e+00 : f32
    %14 = vector.broadcast %cst_6 : f32 to vector<1x32xf32>
    %15 = arith.maximumf %13, %14 : vector<1x32xf32>
    %cst_7 = arith.constant 9.99999974E-6 : f32
    %16 = vector.broadcast %cst_7 : f32 to vector<1x32xf32>
    %17 = arith.addf %15, %16 : vector<1x32xf32>
    %cst_8 = arith.constant 1.000000e+00 : f32
    %18 = vector.broadcast %cst_8 : f32 to vector<1x32xf32>
    %19 = arith.divf %18, %17 : vector<1x32xf32>
    %cst_9 = arith.constant -2.000000e+00 : f32
    %20 = vector.broadcast %cst_9 : f32 to vector<1x32xf32>
    %21 = arith.mulf %20, %9 : vector<1x32xf32>
    %22 = arith.mulf %21, %19 : vector<1x32xf32>
    %23 = arith.mulf %9, %9 : vector<1x32xf32>
    %24 = arith.mulf %23, %19 : vector<1x32xf32>
    %25 = vector.shape_cast %24 : vector<1x32xf32> to vector<1x1x32xf32>
    %cst_10 = arith.constant dense<0.000000e+00> : vector<1xf32>
    %26 = vector.multi_reduction <add>, %25, %cst_10 [1, 2] : vector<1x1x32xf32> to vector<1xf32>
    %27 = vector.shape_cast %26 : vector<1xf32> to vector<1x1x1xf32>
    %28 = vector.extract %27[0, 0, 0] : f32 from vector<1x1x1xf32>
    %29 = vector.shape_cast %19 : vector<1x32xf32> to vector<1x32xf32>
    %30 = vector.broadcast %29 : vector<1x32xf32> to vector<8x32xf32>
    %31 = vector.shape_cast %22 : vector<1x32xf32> to vector<1x32xf32>
    %32 = vector.broadcast %31 : vector<1x32xf32> to vector<8x32xf32>
    %cst_11 = arith.constant dense<0.000000e+00> : vector<8x128xf32>
    %33 = tpu.matmul %30, %1, %cst_11 {dimension_numbers = #tpu.dot_dimension_numbers<[1], [1], [0], [0], [0, 0, 1, 0], [], []>} : vector<8x32xf32>, vector<128x32xf32>, vector<8x128xf32> -> vector<8x128xf32>
    %cst_12 = arith.constant dense<0.000000e+00> : vector<8x128xf32>
    %34 = tpu.matmul %32, %0, %cst_12 {dimension_numbers = #tpu.dot_dimension_numbers<[1], [1], [0], [0], [0, 0, 1, 0], [], []>} : vector<8x32xf32>, vector<128x32xf32>, vector<8x128xf32> -> vector<8x128xf32>
    %35 = vector.extract_strided_slice %33 {offsets = [0, 0], sizes = [1, 128], strides = [1, 1]} : vector<8x128xf32> to vector<1x128xf32>
    %36 = vector.extract_strided_slice %34 {offsets = [0, 0], sizes = [1, 128], strides = [1, 1]} : vector<8x128xf32> to vector<1x128xf32>
    %37 = arith.addf %35, %36 : vector<1x128xf32>
    %38 = vector.broadcast %28 : f32 to vector<1x128xf32>
    %39 = arith.addf %37, %38 : vector<1x128xf32>
    %c0_13 = arith.constant 0 : index
    %c0_14 = arith.constant 0 : index
    %40 = vector.load %arg2[%c0_13, %c0_14] : memref<1x128xf32, #tpu.memory_space<vmem>>, vector<1x128xf32>
    tpu.vector_store %arg2[%c0_13, %c0_14], %39 {strides = array<i32>} : memref<1x128xf32, #tpu.memory_space<vmem>>, vector<1x128xf32>,
    return
  }
  func.func @transform_0(%arg0: i32) -> (i32, i32) {
    %c0_i32 = arith.constant 0 : i32
    %c0_i32_0 = arith.constant 0 : i32
    %c0_i32_1 = arith.constant 0 : i32
    return %c0_i32, %c0_i32_0 : i32, i32
  }
  func.func @transform_1(%arg0: i32) -> (i32, i32) {
    %c0_i32 = arith.constant 0 : i32
    %c0_i32_0 = arith.constant 0 : i32
    %c0_i32_1 = arith.constant 0 : i32
    return %c0_i32, %c0_i32_0 : i32, i32
  }
}

</mosaic_0001>

<bundles_post_ra>
// kernel: tpu_custom_call.1
= control target key start
LH: loop header
LB: loop body
LE: loop exit
PB: predicated region body
PF: predicated region fallthrough
CT: control target
= control target key end

     0   :  { %vm118_vm0 = vcmask 261120   ;;  %s444_s0 = inlined_call_operand.vmem [shape: f32[128,32], index: 0, kind: input, shape index: {}]   ;;  %s445_s1 = inlined_call_operand.hbm [shape: f32[1,128], index: 1, kind: output, shape index: {}]  }
   0x1   :  { %v24_v0 = vld [vmem:[%s444_s0 + $0x78] sm:$0xff]  ;;  %v23_v1 = vld [vmem:[%s444_s0 + $0x70] sm:$0xff]  ;;  %v22_v2 = vld [vmem:[%s444_s0 + $0x68] sm:$0xff] }
   0x2   :  { %41 = vmatpush.msra.mxu0 %v24_v0  ;;  %v40_v3 = vmul.f32 %v24_v0, %v24_v0  ;;  %v39_v4 = vmul.f32 %v23_v1, %v23_v1  ;;  %v21_v5 = vld [vmem:[%s444_s0 + $0x60] sm:$0xff]  ;;  %v38_v6 = vmul.f32 %v22_v2, %v22_v2  ;;  %v20_v7 = vld [vmem:[%s444_s0 + $0x58] sm:$0xff]  ;;  %298 = vmatpush.xpose.msk.msra.mxu3 %vm118_vm0, %v24_v0 }
   0x3   :  { %v37_v8 = vmul.f32 %v21_v5, %v21_v5 }
   0x4   :  { %42 = vmatpush.msra.mxu0 %v23_v1  ;;  %61 = vmatpush.msra.mxu1 %v40_v3 }
   0x5   :  { %281 = vmatpush.xpose.msk.msra.mxu2 %vm118_vm0, %v40_v3 }
   0x6   :  { %43 = vmatpush.msra.mxu0 %v22_v2  ;;  %62 = vmatpush.msra.mxu1 %v39_v4 }
   0x7   :  { %6 = vsyncpa [#allocation3], 0  ;;  %v19_v9 = vld [vmem:[%s444_s0 + $0x50] sm:$0xff]  ;;  %v36_v10 = vmul.f32 %v20_v7, %v20_v7  ;;  %v18_v11 = vld [vmem:[%s444_s0 + $0x48] sm:$0xff]  ;;  %299 = vmatpush.xpose.msk.msra.mxu3 %vm118_vm0, %v23_v1  ;;  %v347_v32 = vmov 1.0   ;;  %vm105_vm5 = vcmask 253952  }
   0x8   :  { %44 = vmatpush.msra.mxu0 %v21_v5  ;;  %63 = vmatpush.msra.mxu1 %v38_v6  ;;  %v35_v12 = vmul.f32 %v19_v9, %v19_v9  ;;  %v17_v13 = vld [vmem:[%s444_s0 + $0x40] sm:$0xff]  ;;  %v34_v14 = vmul.f32 %v18_v11, %v18_v11  ;;  %v16_v15 = vld [vmem:[%s444_s0 + $0x38] sm:$0xff]  ;;  %v15_v17 = vld [vmem:[%s444_s0 + $0x30] sm:$0xff]  ;;  %s272_s12 = sshll.u32 %s445_s1, 4  ;;  %s273_s12 = int_to_ptr.hbm [resolvable:$true] %s272_s12 }
   0x9   :  { %282 = vmatpush.xpose.msk.msra.mxu2 %vm118_vm0, %v39_v4  ;;  %v33_v16 = vmul.f32 %v17_v13, %v17_v13  ;;  %v32_v18 = vmul.f32 %v16_v15, %v16_v15  ;;  %v14_v19 = vld [vmem:[%s444_s0 + $0x28] sm:$0xff]  ;;  %v31_v20 = vmul.f32 %v15_v17, %v15_v17  ;;  %v13_v21 = vld [vmem:[%s444_s0 + $0x20] sm:$0xff]  ;;  %v12_v23 = vld [vmem:[%s444_s0 + $0x18] sm:$0xff] }
   0xa   :  { %45 = vmatpush.msra.mxu0 %v20_v7  ;;  %64 = vmatpush.msra.mxu1 %v37_v8  ;;  %v30_v22 = vmul.f32 %v14_v19, %v14_v19  ;;  %v29_v24 = vmul.f32 %v13_v21, %v13_v21  ;;  %v11_v25 = vld [vmem:[%s444_s0 + $0x10] sm:$0xff]  ;;  %v28_v26 = vmul.f32 %v12_v23, %v12_v23  ;;  %v10_v27 = vld [vmem:[%s444_s0 + $0x8] sm:$0xff]  ;;  %v9_v29 = vld [vmem:[%s444_s0] sm:$0xff]  ;;  %s348_s0 = smov [#allocation2]  }
   0xb   :  { %300 = vmatpush.xpose.msk.msra.mxu3 %vm118_vm0, %v22_v2  ;;  %v27_v28 = vmul.f32 %v11_v25, %v11_v25  ;;  %v26_v30 = vmul.f32 %v10_v27, %v10_v27  ;;  %v25_v31 = vmul.f32 %v9_v29, %v9_v29  ;;  %s270_s9 = sshll.u32 %s348_s0, 4  ;;  %s271_s9 = int_to_ptr.vmem [resolvable:$true] %s270_s9 }
   0xc   :  { %46 = vmatpush.msra.mxu0 %v19_v9  ;;  %65 = vmatpush.msra.mxu1 %v36_v10 }
   0xd   :  { %283 = vmatpush.xpose.msk.msra.mxu2 %vm118_vm0, %v38_v6 }
   0xe   :  { %47 = vmatpush.msra.mxu0 %v18_v11  ;;  %66 = vmatpush.msra.mxu1 %v35_v12 }
   0xf   :  { %301 = vmatpush.xpose.msk.msra.mxu3 %vm118_vm0, %v21_v5 }
  0x10   :  { %48 = vmatpush.msra.mxu0 %v17_v13  ;;  %67 = vmatpush.msra.mxu1 %v34_v14 }
  0x11   :  { %284 = vmatpush.xpose.msk.msra.mxu2 %vm118_vm0, %v37_v8 }
  0x12   :  { %49 = vmatpush.msra.mxu0 %v16_v15  ;;  %68 = vmatpush.msra.mxu1 %v33_v16 }
  0x13   :  { %302 = vmatpush.xpose.msk.msra.mxu3 %vm118_vm0, %v20_v7 }
  0x14   :  { %50 = vmatpush.msra.mxu0 %v15_v17  ;;  %69 = vmatpush.msra.mxu1 %v32_v18 }
  0x15   :  { %285 = vmatpush.xpose.msk.msra.mxu2 %vm118_vm0, %v36_v10 }
  0x16   :  { %51 = vmatpush.msra.mxu0 %v14_v19  ;;  %70 = vmatpush.msra.mxu1 %v31_v20 }
  0x17   :  { %303 = vmatpush.xpose.msk.msra.mxu3 %vm118_vm0, %v19_v9 }
  0x18   :  { %52 = vmatpush.msra.mxu0 %v13_v21  ;;  %71 = vmatpush.msra.mxu1 %v30_v22 }
  0x19   :  { %286 = vmatpush.xpose.msk.msra.mxu2 %vm118_vm0, %v35_v12 }
  0x1a   :  { %53 = vmatpush.msra.mxu0 %v12_v23  ;;  %72 = vmatpush.msra.mxu1 %v29_v24 }
  0x1b   :  { %304 = vmatpush.xpose.msk.msra.mxu3 %vm118_vm0, %v18_v11 }
  0x1c   :  { %54 = vmatpush.msra.mxu0 %v11_v25  ;;  %73 = vmatpush.msra.mxu1 %v28_v26 }
  0x1d   :  { %287 = vmatpush.xpose.msk.msra.mxu2 %vm118_vm0, %v34_v14 }
  0x1e   :  { %55 = vmatpush.msra.mxu0 %v10_v27  ;;  %74 = vmatpush.msra.mxu1 %v27_v28 }
  0x1f   :  { %305 = vmatpush.xpose.msk.msra.mxu3 %vm118_vm0, %v17_v13 }
  0x20   :  { %56 = vmatpush.msra.mxu0 %v9_v29  ;;  %75 = vmatpush.msra.mxu1 %v26_v30 }
  0x21   :  { %57 = vmatmul.f32.vlgmr.msra.gmra.mxu0 %v347_v32  ;;  %288 = vmatpush.xpose.msk.msra.mxu2 %vm118_vm0, %v33_v16 }
  0x22   :  { %76 = vmatpush.msra.mxu1 %v25_v31 }
  0x23   :  { %77 = vmatmul.f32.vlgmr.msra.gmra.mxu1 %v347_v32  ;;  %306 = vmatpush.xpose.msk.msra.mxu3 %vm118_vm0, %v16_v15 }
  0x25   :  { %289 = vmatpush.xpose.msk.msra.mxu2 %vm118_vm0, %v32_v18 }
  0x27   :  { %307 = vmatpush.xpose.msk.msra.mxu3 %vm118_vm0, %v15_v17 }
  0x29   :  { %290 = vmatpush.xpose.msk.msra.mxu2 %vm118_vm0, %v31_v20 }
  0x2b   :  { %308 = vmatpush.xpose.msk.msra.mxu3 %vm118_vm0, %v14_v19 }
  0x2d   :  { %291 = vmatpush.xpose.msk.msra.mxu2 %vm118_vm0, %v30_v22 }
  0x2f   :  { %309 = vmatpush.xpose.msk.msra.mxu3 %vm118_vm0, %v13_v21 }
  0x31   :  { %292 = vmatpush.xpose.msk.msra.mxu2 %vm118_vm0, %v29_v24 }
  0x33   :  { %310 = vmatpush.xpose.msk.msra.mxu3 %vm118_vm0, %v12_v23 }
  0x35   :  { %293 = vmatpush.xpose.msk.msra.mxu2 %vm118_vm0, %v28_v26 }
  0x37   :  { %311 = vmatpush.xpose.msk.msra.mxu3 %vm118_vm0, %v11_v25 }
  0x39   :  { %294 = vmatpush.xpose.msk.msra.mxu2 %vm118_vm0, %v27_v28 }
  0x3b   :  { %312 = vmatpush.xpose.msk.msra.mxu3 %vm118_vm0, %v10_v27 }
  0x3d   :  { %295 = vmatpush.xpose.msk.msra.mxu2 %vm118_vm0, %v26_v30 }
  0x3f   :  { %313 = vmatpush.xpose.msk.msra.mxu3 %vm118_vm0, %v9_v29 }
  0x41   :  { %296 = vmatpush.xpose.msk.msra.mxu2 %vm118_vm0, %v25_v31 }
  0x9e   :  { %v58_v33 = vpop.f32.mrf.mxu0 }
  0x9f   :  { %v81_v34 = vmul.f32 0.0625, %v58_v33 }
  0xa0   :  { %v78_v35 = vpop.f32.mrf.mxu1 }
  0xa1   :  { %v83_v36 = vmul.f32 %v81_v34, %v81_v34  ;;  %v82_v37 = vmul.f32 0.0625, %v78_v35  ;;  %v102_v49 = vmul.f32 -2.0, %v81_v34 }
  0xa3   :  { %v84_v38 = vsub.f32 %v82_v37, %v83_v36 }
  0xa5   :  { %v85_v39 = vmax.f32 %v84_v38, 0.0 }
  0xa7   :  { %v86_v40 = vadd.f32 1e-05, %v85_v39 }
  0xa9   :  { %319 = vrcp.f32 %v86_v40  ;;  %v98_v44 = vand.u32 2147483648, %v86_v40  ;;  %v96_v46 = vand.u32 2147483647, %v86_v40  ;;  %vm92_vm2 = vweird.f32 %v86_v40 }
  0xab   :  { %v99_v48 = vor.u32 1.1754944e-38, %v98_v44  ;;  %vm97_vm4 = vcmp.eq.f32.partialorder %v96_v46, 8.507059e+37 }
  0xaf   :  { %v320_v41 = vpop.eup %319 }
  0xb0   :  { %v88_v42 = vmul.f32 %v320_v41, %v86_v40  ;;  %vm93_vm1 = vweird.f32 %v320_v41 }
  0xb1   :  { %vm94_vm3 = vmor %vm92_vm2, %vm93_vm1 }
  0xb2   :  { %v89_v43 = vsub.f32 1.0, %v88_v42 }
  0xb4   :  { %v90_v45 = vmul.f32 %v320_v41, %v89_v43 }
  0xb6   :  { %v91_v47 = vadd.f32 %v320_v41, %v90_v45 }
  0xb8   :  { %v95_v50 = vsel %vm94_vm3, %v320_v41, %v91_v47 }
  0xb9   :  { %v100_v51 = vsel %vm97_vm4, %v99_v48, %v95_v50 }
  0xba   :  { %v116_v52 = vperm.slane %v100_v51, 0  ;;  %v104_v53 = vmul.f32 %v100_v51, %v83_v36  ;;  %v103_v54 = vmul.f32 %v102_v49, %v100_v51 }
  0xbc   :  { %297 = vmatmul.msk.f32.vlgmr.msra.gmra.mxu2 %vm118_vm0, %v116_v52  ;;  %v106_v55 = vsel %vm105_vm5, %v104_v53, 0.0  ;;  %v117_v56 = vperm.slane %v103_v54, 0 }
  0xbd   :  { %107 = vadd.xlane.f32.xlu0 %v106_v55 }
  0xbe   :  { %314 = vmatmul.msk.f32.vlgmr.msra.gmra.mxu3 %vm118_vm0, %v117_v56 }
 0x130   :  { %v108_v57 = vpop.xlane.xlu0 %107 }
 0x131   :  { %v109_v58 = vrot.slane %v108_v57, 4 }
 0x133   :  { %v110_v59 = vadd.f32 %v109_v58, %v108_v57 }
 0x135   :  { %v111_v60 = vrot.slane %v110_v59, 2 }
 0x137   :  { %v112_v61 = vadd.f32 %v111_v60, %v110_v59 }
 0x139   :  { %v113_v62 = vrot.slane %v112_v61, 1 }
 0x13b   :  { %v114_v63 = vadd.f32 %v113_v62, %v112_v61 }
 0x13d   :  { %315 = vpush %v114_v63 }
 0x13f   :  { %v187_v1 = vpop.f32.mrf.mxu2 }
 0x141   :  { %v258_v0 = vpop.f32.mrf.mxu3 }
 0x142   :  { %v261_v2 = vadd.f32 %v258_v0, %v187_v1 }
 0x16e   :  { %s316_s13 = spop %315 }
 0x16f   :  { %v262_v3 = vstv %s316_s13 }
 0x170   :  { %v263_v4 = vadd.f32 %v262_v3, %v261_v2 }
 0x172   :  { %264 = vst [vmem:[#allocation2] sm:$0x1] %v263_v4 }
 0x173   :  { %275 = dma.vmem_to_hbm [thread:$0]  %s271_s9, 16, %s273_s12, [#allocation3]  }
 0x174   :  { %345 = dma.done.wait [#allocation3], 16  }
 0x175   :  { %346 = vsyncadd [#allocation3], 4294967280 }
 0x176   :  { %280 = vsyncpa [#allocation3], 1 }

</bundles_post_ra>
